<compile_context>
chip_gen: v5e
topology: v5e:2x2
jax: 0.10.0
libtpu: 0.0.40
codegen_flags: <defaults>
</compile_context>

<pallas_src>
import math

import jax
import jax.numpy as jnp
from jax import lax
from jax.experimental import pallas as pl
from jax.experimental.pallas import tpu as pltpu


def make_arcnet_kernel(scale, margin, tile_c):
    cos_m = math.cos(margin)
    sin_m = math.sin(margin)
    threshold = math.cos(math.pi - margin)
    mm = sin_m * margin
    eps = 1e-12  # F.normalize default eps (clamps the norm); use eps^2 on sumsq

    def kernel(feat_ref, w_ref, label_ref, out_ref):
        j = pl.program_id(0)

        feat = feat_ref[...].astype(jnp.float32)                 # (B, D) f32
        w = w_ref[...]                                           # (D, Tc) f32/bf16

        # ---- normalization factors (post-matmul scaling; rsqrt -> EUP) ----
        # 1 / max(||feat_row||, eps); recomputed per tile (B*D is negligible
        # and keeps the class axis trivially parallel across TensorCores).
        f_sumsq = jnp.sum(feat * feat, axis=1, keepdims=True)    # (B, 1)
        f_inv = lax.rsqrt(jnp.maximum(f_sumsq, eps * eps))

        # 1 / max(||weight_col||, eps), per column of this tile, in f32.
        w_f32 = w.astype(jnp.float32)
        w_sumsq = jnp.sum(w_f32 * w_f32, axis=0, keepdims=True)  # (1, Tc)
        w_inv = lax.rsqrt(jnp.maximum(w_sumsq, eps * eps))

        # ---- MXU matmul on the raw (un-normalized) operands ----
        raw = jnp.dot(feat.astype(w.dtype), w,
                      preferred_element_type=jnp.float32)        # (B, Tc) f32
        cos_theta = raw * f_inv * w_inv

        # ---- ArcFace margin (f32 epilogue) ----
        sin_theta = jnp.sqrt(jnp.clip(1.0 - cos_theta * cos_theta, 0.0, 1.0))
        cos_theta_m = cos_theta * cos_m - sin_theta * sin_m
        cos_theta_m = jnp.where(cos_theta > threshold, cos_theta_m,
                                cos_theta - mm)

        # one-hot(label) restricted to this class tile: iota offset by j*Tc.
        label = label_ref[...]                                   # (B, 1) int32
        class_iota = lax.broadcasted_iota(jnp.int32, cos_theta.shape, 1)
        one_hot = (class_iota + j * tile_c) == label             # (B, Tc) bool

        out = jnp.where(one_hot, cos_theta_m, cos_theta) * scale
        out_ref[...] = out.astype(out_ref.dtype)

    return kernel


def _pick_tile_c(B, D, C, weight_itemsize, vmem_budget_bytes=24 * 1024 * 1024):
    """Largest lane-dense class tile whose double-buffered weight tile + output
    tile fit a VMEM budget small enough for v7x (64 MiB physical)."""
    if C <= 512:
        return int(C)
    per_col = 2 * D * weight_itemsize + 2 * B * 4  # dbl-buffered weight + out
    tile = vmem_budget_bytes // max(per_col, 1)
    tile = max(128, (tile // 128) * 128)
    return int(min(tile, C))


def arcnet_forward(feature, weight, label, *, scale=64.0, margin=0.5,
                   tile_c=None):
    """feature: (B, D) f32, weight: (D, C) f32/bf16, label: (B,) int -> (B, C) f32."""
    B, D = feature.shape
    Dw, C = weight.shape
    assert D == Dw
    label2d = label.astype(jnp.int32).reshape(B, 1)

    w_itemsize = jnp.dtype(weight.dtype).itemsize
    if tile_c is None:
        tile_c = _pick_tile_c(B, D, C, w_itemsize)
    grid = (pl.cdiv(C, tile_c),)

    kernel = make_arcnet_kernel(scale, margin, tile_c)

    cost = pl.CostEstimate(
        flops=2 * B * D * C,
        transcendentals=B * C + C + B,   # sqrt per logit + rsqrt per col/row
        bytes_accessed=(D * C * w_itemsize
                        + B * D * jnp.dtype(feature.dtype).itemsize
                        + B * C * 4),
    )

    # TODO(synk): for large batches, add a second (batch) grid axis with a
    # 128/256-row M tile to fill all MXU rows; B is small here so it stays
    # fully resident.
    return pl.pallas_call(
        kernel,
        out_shape=jax.ShapeDtypeStruct((B, C), jnp.float32),
        grid=grid,
        in_specs=[
            pl.BlockSpec((B, D), lambda j: (0, 0)),        # feature: resident
            pl.BlockSpec((D, tile_c), lambda j: (0, j)),   # weight: streamed
            pl.BlockSpec((B, 1), lambda j: (0, 0)),        # label: resident
        ],
        out_specs=pl.BlockSpec((B, tile_c), lambda j: (0, j)),
        compiler_params=pltpu.CompilerParams(
            dimension_semantics=("parallel",),
            vmem_limit_bytes=32 * 1024 * 1024,
        ),
        cost_estimate=cost,
    )(feature, weight, label2d)


def arcnet_reference(feature, weight, label, *, scale=64.0, margin=0.5):
    """Pure-JAX reference matching the PyTorch module semantics (f32)."""
    eps = 1e-12
    cos_m, sin_m = math.cos(margin), math.sin(margin)
    threshold = math.cos(math.pi - margin)
    mm = sin_m * margin

    f_n = feature / jnp.maximum(
        jnp.linalg.norm(feature, axis=1, keepdims=True), eps)
    w_n = weight / jnp.maximum(
        jnp.linalg.norm(weight, axis=0, keepdims=True), eps)
    cos_theta = f_n @ w_n
    sin_theta = jnp.sqrt(jnp.clip(1.0 - cos_theta ** 2, 0.0, 1.0))
    cos_theta_m = cos_theta * cos_m - sin_theta * sin_m
    cos_theta_m = jnp.where(cos_theta > threshold, cos_theta_m, cos_theta - mm)
    one_hot = jax.nn.one_hot(label, weight.shape[1], dtype=cos_theta.dtype)
    out = jnp.where(one_hot == 1.0, cos_theta_m, cos_theta)
    return out * scale


if __name__ == "__main__":
    # Small TPU-friendly shapes: batch=8, feature_dim=32, classes=256
    # (two 128-wide class tiles -> exercises the tiled grid + iota offset).
    B, D, C = 8, 32, 256
    scale, margin = 64.0, 0.5

    key = jax.random.PRNGKey(0)
    k_feat, k_w, k_lab = jax.random.split(key, 3)

    feature = jax.random.normal(k_feat, (B, D), dtype=jnp.float32)

    # Deterministic xavier_uniform_ init for weight (feature_dim, class_dim)
    bound = math.sqrt(6.0 / (D + C))
    weight = jax.random.uniform(k_w, (D, C), dtype=jnp.float32,
                                minval=-bound, maxval=bound)

    label = jax.random.randint(k_lab, (B,), 0, C, dtype=jnp.int32)

    ref = arcnet_reference(feature, weight, label, scale=scale, margin=margin)

    # f32 path, multi-tile class grid.
    out = arcnet_forward(feature, weight, label, scale=scale, margin=margin,
                         tile_c=128)
    out = jax.block_until_ready(out)
    assert out.shape == (B, C)
    assert jnp.allclose(out, ref, atol=1e-3, rtol=1e-4), "f32 mismatch vs ref"

    # bf16-weight path (halves the dominant HBM weight stream); epilogue is
    # still f32, so only matmul-input quantization error remains.
    out_bf16 = arcnet_forward(feature, weight.astype(jnp.bfloat16), label,
                              scale=scale, margin=margin, tile_c=128)
    out_bf16 = jax.block_until_ready(out_bf16)
    assert out_bf16.shape == (B, C)
    assert bool(jnp.isfinite(out_bf16).all())
    assert jnp.allclose(out_bf16, ref, atol=1.0, rtol=5e-2), "bf16 path diverged"

    print("KERNEL_OK")
</pallas_src>

<mosaic_0001>
module attributes {stable_mosaic.version = 11 : i64} {
  func.func @kernel(%arg0: i32, %arg1: memref<8x32xf32, #tpu.memory_space<vmem>>, %arg2: memref<32x128xf32, #tpu.memory_space<vmem>>, %arg3: memref<8x1xi32, #tpu.memory_space<vmem>>, %arg4: memref<8x128xf32, #tpu.memory_space<vmem>>) attributes {dimension_semantics = [#tpu.dimension_semantics<parallel>], iteration_bounds = array<i64: 2>, scalar_prefetch = 0 : i64, scratch_operands = 0 : i64, tpu.core_type = #tpu.core_type<tc>, window_params = [{pipeline_mode = #tpu.pipeline_mode<synchronous>, transform_indices = @transform_0, window_bounds = array<i64: 8, 32>}, {transform_indices = @transform_1, window_bounds = array<i64: 32, 128>}, {pipeline_mode = #tpu.pipeline_mode<synchronous>, transform_indices = @transform_2, window_bounds = array<i64: 8, 1>}, {transform_indices = @transform_3, window_bounds = array<i64: 8, 128>}]} {
    %c0 = arith.constant 0 : index
    %c0_0 = arith.constant 0 : index
    %0 = vector.load %arg1[%c0, %c0_0] : memref<8x32xf32, #tpu.memory_space<vmem>>, vector<8x32xf32>
    %c0_1 = arith.constant 0 : index
    %c0_2 = arith.constant 0 : index
    %1 = vector.load %arg2[%c0_1, %c0_2] : memref<32x128xf32, #tpu.memory_space<vmem>>, vector<32x128xf32>
    %2 = arith.mulf %0, %0 : vector<8x32xf32>
    %cst = arith.constant dense<0.000000e+00> : vector<8xf32>
    %3 = vector.multi_reduction <add>, %2, %cst [1] : vector<8x32xf32> to vector<8xf32>
    %4 = vector.shape_cast %3 : vector<8xf32> to vector<8x1xf32>
    %cst_3 = arith.constant 1.000000e-24 : f32
    %5 = vector.broadcast %cst_3 : f32 to vector<8x1xf32>
    %6 = arith.maximumf %4, %5 : vector<8x1xf32>
    %7 = math.rsqrt %6 : vector<8x1xf32>
    %8 = arith.mulf %1, %1 : vector<32x128xf32>
    %cst_4 = arith.constant dense<0.000000e+00> : vector<128xf32>
    %9 = vector.multi_reduction <add>, %8, %cst_4 [0] : vector<32x128xf32> to vector<128xf32>
    %10 = vector.shape_cast %9 : vector<128xf32> to vector<1x128xf32>
    %cst_5 = arith.constant 1.000000e-24 : f32
    %11 = vector.broadcast %cst_5 : f32 to vector<1x128xf32>
    %12 = arith.maximumf %10, %11 : vector<1x128xf32>
    %13 = math.rsqrt %12 : vector<1x128xf32>
    %cst_6 = arith.constant dense<0.000000e+00> : vector<8x128xf32>
    %14 = tpu.matmul %0, %1, %cst_6 {dimension_numbers = #tpu.dot_dimension_numbers<[1], [0], [0], [1], [0, 0, 1, 1], [], []>} : vector<8x32xf32>, vector<32x128xf32>, vector<8x128xf32> -> vector<8x128xf32>
    %15 = vector.broadcast %7 : vector<8x1xf32> to vector<8x128xf32>
    %16 = arith.mulf %14, %15 : vector<8x128xf32>
    %17 = vector.broadcast %13 : vector<1x128xf32> to vector<8x128xf32>
    %18 = arith.mulf %16, %17 : vector<8x128xf32>
    %19 = arith.mulf %18, %18 : vector<8x128xf32>
    %cst_7 = arith.constant 1.000000e+00 : f32
    %20 = vector.broadcast %cst_7 : f32 to vector<8x128xf32>
    %21 = arith.subf %20, %19 : vector<8x128xf32>
    %cst_8 = arith.constant 0.000000e+00 : f32
    %cst_9 = arith.constant 1.000000e+00 : f32
    %22 = vector.broadcast %cst_8 : f32 to vector<8x128xf32>
    %23 = arith.maximumf %22, %21 : vector<8x128xf32>
    %24 = vector.broadcast %cst_9 : f32 to vector<8x128xf32>
    %25 = arith.minimumf %24, %23 : vector<8x128xf32>
    %26 = math.sqrt %25 : vector<8x128xf32>
    %cst_10 = arith.constant 0.87758255 : f32
    %27 = vector.broadcast %cst_10 : f32 to vector<8x128xf32>
    %28 = arith.mulf %18, %27 : vector<8x128xf32>
    %cst_11 = arith.constant 0.47942555 : f32
    %29 = vector.broadcast %cst_11 : f32 to vector<8x128xf32>
    %30 = arith.mulf %26, %29 : vector<8x128xf32>
    %31 = arith.subf %28, %30 : vector<8x128xf32>
    %cst_12 = arith.constant -0.87758255 : f32
    %32 = vector.broadcast %cst_12 : f32 to vector<8x128xf32>
    %33 = arith.cmpf ogt, %18, %32 : vector<8x128xf32>
    %cst_13 = arith.constant 0.239712775 : f32
    %34 = vector.broadcast %cst_13 : f32 to vector<8x128xf32>
    %35 = arith.subf %18, %34 : vector<8x128xf32>
    %36 = arith.select %33, %31, %35 : vector<8x128xi1>, vector<8x128xf32>
    %c0_14 = arith.constant 0 : index
    %c0_15 = arith.constant 0 : index
    %37 = vector.load %arg3[%c0_14, %c0_15] : memref<8x1xi32, #tpu.memory_space<vmem>>, vector<8x1xi32>
    %38 = tpu.iota {dimensions = array<i32: 1>} : vector<8x128xi32>
    %c128_i32 = arith.constant 128 : i32
    %39 = arith.muli %arg0, %c128_i32 : i32
    %40 = vector.broadcast %39 : i32 to vector<8x128xi32>
    %41 = arith.addi %38, %40 : vector<8x128xi32>
    %42 = vector.broadcast %37 : vector<8x1xi32> to vector<8x128xi32>
    %43 = arith.cmpi eq, %41, %42 : vector<8x128xi32>
    %44 = arith.select %43, %36, %18 : vector<8x128xi1>, vector<8x128xf32>
    %cst_16 = arith.constant 6.400000e+01 : f32
    %45 = vector.broadcast %cst_16 : f32 to vector<8x128xf32>
    %46 = arith.mulf %44, %45 : vector<8x128xf32>
    %c0_17 = arith.constant 0 : index
    %c0_18 = arith.constant 0 : index
    %47 = vector.load %arg4[%c0_17, %c0_18] : memref<8x128xf32, #tpu.memory_space<vmem>>, vector<8x128xf32>
    tpu.vector_store %arg4[%c0_17, %c0_18], %46 {strides = array<i32>} : memref<8x128xf32, #tpu.memory_space<vmem>>, vector<8x128xf32>,
    return
  }
  func.func @transform_0(%arg0: i32) -> (i32, i32) {
    %c0_i32 = arith.constant 0 : i32
    %c0_i32_0 = arith.constant 0 : i32
    %c0_i32_1 = arith.constant 0 : i32
    return %c0_i32, %c0_i32_0 : i32, i32
  }
  func.func @transform_1(%arg0: i32) -> (i32, i32) {
    %c0_i32 = arith.constant 0 : i32
    %c0_i32_0 = arith.constant 0 : i32
    return %c0_i32, %arg0 : i32, i32
  }
  func.func @transform_2(%arg0: i32) -> (i32, i32) {
    %c0_i32 = arith.constant 0 : i32
    %c0_i32_0 = arith.constant 0 : i32
    %c0_i32_1 = arith.constant 0 : i32
    return %c0_i32, %c0_i32_0 : i32, i32
  }
  func.func @transform_3(%arg0: i32) -> (i32, i32) {
    %c0_i32 = arith.constant 0 : i32
    %c0_i32_0 = arith.constant 0 : i32
    return %c0_i32, %arg0 : i32, i32
  }
}

</mosaic_0001>

<bundles_post_ra>
// kernel: tpu_custom_call.1
= control target key start
LH: loop header
LB: loop body
LE: loop exit
PB: predicated region body
PF: predicated region fallthrough
CT: control target
= control target key end

     0   :  { %8 = vsyncpa [#allocation3], 0  ;;  %s710_s0 = inlined_call_operand.vmem [shape: f32[8,32], index: 0, kind: input, shape index: {}]   ;;  %s711_s1 = inlined_call_operand.hbm [shape: f32[32,256], index: 1, kind: input, shape index: {}]   ;;  %s712_s2 = inlined_call_operand.vmem [shape: s32[8,1], index: 2, kind: input, shape index: {}]   ;;  %s713_s3 = inlined_call_operand.hbm [shape: f32[8,256], index: 3, kind: output, shape index: {}]  }
   0x1   :  { %10 = vsyncpa [#allocation3 + $0x1], 0 }
   0x2   :  { %11 = vsyncpa [#allocation4], 0 }
   0x3   :  { %13 = vsyncpa [#allocation4 + $0x1], 0  ;;  %s575_s12 = smov 0   ;;  %s577_s13 = smov 0  }
   0x4   :  { %s579_s14 = smov 0   ;;  %s581_s15 = smov 0  }
   0x5 LB: > { %s596_s16 = sadd.s32 4294967295, %s549_s15   ;;  %s381_s17 = sadd.s32 4294967294, %s549_s15   ;;  %s549_s15 = sphi %s581_s15, %s722_s15   ;;  %s545_s14 = sphi %s579_s14, %s721_s14   ;;  %s541_s13 = sphi %s577_s13, %s720_s13   ;;  %s537_s12 = sphi %s575_s12, %s719_s12  }
   0x6   : > { %s600_s18 = sadd.s32 1, %s549_s15   ;;  %s47_s19 = sadd.s32 1, %s545_s14 }
   0x7   : > { %s44_s20 = ssub.s32 %s549_s15, %s600_s18  ;;  %p54_p0 = scmp.ne.s32.totalorder %s545_s14, %s541_s13 }
   0x8   : > { %p45_p1 = scmp.eq.s32.totalorder %s44_s20, 0  ;;  %p55_p2 = scmp.eq.s32.totalorder %s549_s15, 0 }
   0x9   : > { %p60_p3 = scmp.ne.s32.totalorder %s541_s13, %s537_s12  ;;  %p61_p4 = scmp.eq.s32.totalorder %s596_s16, 0 }
   0xa   : > { %s612_s21 = scalar_select %p45_p1, %s545_s14, %s47_s19  }
   0xb   : > { %p614_p5 = por %p55_p2, %p54_p0  ;;  %p618_p6 = por %p61_p4, %p60_p3 }
   0xc   : > { %p105_p7 = scmp.eq.s32.totalorder %s596_s16, 1  ;;  %p111_p8 = scmp.eq.s32.totalorder %s381_s17, 1 }
   0xd   : > { %p383_p9 = scmp.ge.s32.totalorder %s549_s15, 2  ;;  %p408_p10 = scmp.lt.s32.totalorder %s549_s15, 2 }
   0xe   : > { %p625_p11 = por %p105_p7, %p54_p0  ;;  %p629_p12 = por %p111_p8, %p60_p3 }
   0xf   : > { %s137_s26 = sand.u32 1, %s545_s14   ;;  %s385_s27 = sshll.u32 %s549_s15, 3 }
  0x10   : > { %s384_s28 = sshll.u32 %s137_s26, 5  ;;  %s145_s4 = scalar_lea.hbm %s711_s1, %s385_s27 }
  0x11   : > { %s146_s5 = sshll.u32 %s145_s4, 4  ;;  %s141_s6 = scalar_lea.vmem [#allocation2], %s384_s28  ;;  %s147_s5 = int_to_ptr.hbm [resolvable:$true] %s146_s5 }
  0x12   : > { %s148_s7 = sshll.u32 %s141_s6, 4  ;;  %p640_p13 = pnand %p408_p10, %p614_p5  ;;  %s149_s7 = int_to_ptr.vmem [resolvable:$true] %s148_s7 }
  0x13   : > { %p386_p0 = scmp.ge.s32.totalorder %s549_s15, 1  ;;  %s138_s9 = scalar_lea.sflag [#allocation3], %s137_s26 }
  0x14   : > { %s453_s10 = sshra.s32 %s147_s5, 4  ;;  %p457_p2 = pneg %p640_p13  ;;  %s454_s10 = int_to_ptr.hbm [resolvable:$true] %s453_s10 }
  0x15   : > { %s455_s11 = scalar_lea.hbm %s454_s10, 32  ;;  %s460_s20 = scalar_lea.hbm %s711_s1, 64 }
  0x16   : > { %p456_p1 = scmp.ne.s32.totalorder %s454_s10, %s455_s11  ;;  %p461_p5 = scmp.lt.s32.totalorder %s454_s10, %s711_s1 }
  0x17   : > { %p462_p7 = scmp.lt.s32.totalorder %s460_s20, %s455_s11 }
  0x18   : > { %p458_p3 = pnand %p457_p2, %p456_p1 }
  0x19   : > { %p463_p8 = por %p462_p7, %p461_p5 }
  0x1a   : > { %p459_p4 = pneg %p458_p3 }
  0x1c   : > { %p464_p10 = pnand %p463_p8, %p459_p4 }
  0x1e   : > { %467 = shalt.err (!%p464_p10)
}
  0x1f   : > { %s551_s26 = smov 256   ;;  %s552_s28 = smov 128  }
  0x20   : > { %s553_s29 = smov 8   ;;  %p156_p1 = scmp.lt.s32.totalorder %s549_s15, 3 }
  0x21   : > { %403 = dma.hbm_to_vmem [thread:$0]  (!%p640_p13), %s147_s5, 512, %s149_s7, %s138_s9, %s551_s26, %s552_s28, %s553_s29  }
  0x22   : > { %p157_p2 = pnand %p386_p0, %p156_p1 }
  0x23   : > { %s659_s30 = sand.u32 (!%p157_p2), 1, %s541_s13  }
  0x24   : > { %160 = sbr.rel (%p157_p2) target bundleno = 226 (0xe2), region = 32  ;;  %s387_s4 = sshll.u32 (!%p157_p2), %s659_s30, 5 }
  0x25   : > { %s163_s6 = scalar_lea.sflag (!%p157_p2), [#allocation3], %s659_s30  ;;  %s166_s10 = scalar_lea.vmem (!%p157_p2), [#allocation2], %s387_s4 }
  0x29   : > { %528 = dma.done.wait (%p618_p6), %s163_s6, 512  }
  0x2a   : > { %530 = vsyncadd (%p618_p6), %s163_s6, 4294966784  ;;  %v554_v0 = vmov 0   ;;  %v190_v1 = vld [vmem:[%s710_s0] sm:$0xff]  ;;  %vm196_vm0 = vcmask 261120   ;;  %v194_v2 = vld [vmem:[%s166_s10 + $0x18] sm:$0xff]  ;;  %v283_v50 = vlaneseq  ;;  %s391_s9 = sshll.u32 %s596_s16, 7 }
  0x2b   : > { %446 = vset.pattern.permute.xlu0 %v554_v0  ;;  %v193_v3 = vld [vmem:[%s166_s10 + $0x10] sm:$0xff]  ;;  %v195_v4 = vmul.f32 %v190_v1, %v190_v1  ;;  %250 = vmatpush.msra.mxu0 %v194_v2  ;;  %v192_v5 = vld [vmem:[%s166_s10 + $0x8] sm:$0xff]  ;;  %v191_v6 = vld [vmem:[%s166_s10] sm:$0xff]  ;;  %v214_v11 = vmul.f32 %v194_v2, %v194_v2  ;;  %v286_v54 = vstv %s391_s9  ;;  %s388_s11 = sshll.u32 %s659_s30, 3  ;;  %s393_s17 = sshll.u32 %s596_s16, 3 }
  0x2c   : > { %v213_v7 = vmul.f32 %v193_v3, %v193_v3  ;;  %v212_v8 = vmul.f32 %v192_v5, %v192_v5  ;;  %v211_v9 = vmul.f32 %v191_v6, %v191_v6  ;;  %v282_v15 = vld [vmem:[%s712_s2] sm:$0xff]  ;;  %v284_v53 = vand.u32 127, %v283_v50  ;;  %s306_s22 = scalar_lea.hbm %s713_s3, %s393_s17  ;;  %s189_s27 = scalar_lea.vmem [#allocation5], %s388_s11 }
  0x2d   : > { %v197_v10 = vsel %vm196_vm0, %v195_v4, 0.0  ;;  %251 = vmatpush.msra.mxu0 %v193_v3  ;;  %s308_s26 = sshll.u32 %s189_s27, 4  ;;  %s310_s16 = sshll.u32 %s306_s22, 4  ;;  %s309_s26 = int_to_ptr.vmem [resolvable:$true] %s308_s26  ;;  %s311_s16 = int_to_ptr.hbm [resolvable:$true] %s310_s16 }
  0x2e   : > { %198 = vadd.xlane.f32.xlu0 %v197_v10  ;;  %v215_v12 = vadd.f32 %v212_v8, %v211_v9  ;;  %v287_v58 = vadd.s32 %v286_v54, %v284_v53  ;;  %s296_s28 = scalar_lea.sflag [#allocation4], %s659_s30  ;;  %s497_s29 = sshra.s32 %s311_s16, 4  ;;  %s498_s29 = int_to_ptr.hbm [resolvable:$true] %s497_s29 }
  0x2f   : > { %252 = vmatpush.msra.mxu0 %v192_v5  ;;  %s499_s4 = scalar_lea.hbm %s498_s29, 8  ;;  %s503_s5 = scalar_lea.hbm %s713_s3, 16 }
  0x30   : > { %v216_v13 = vadd.f32 %v215_v12, %v213_v7  ;;  %p500_p6 = scmp.ne.s32.totalorder %s498_s29, %s499_s4  ;;  %p504_p3 = scmp.lt.s32.totalorder %s498_s29, %s713_s3 }
  0x31   : > { %253 = vmatpush.msra.mxu0 %v191_v6  ;;  %p505_p4 = scmp.lt.s32.totalorder %s503_s5, %s499_s4 }
  0x32   : > { %v217_v14 = vadd.f32 %v216_v13, %v214_v11  ;;  %389 = vmatmul.msk.f32.vlgmr.msra.gmra.mxu0 %vm196_vm0, %v190_v1  ;;  %p501_p13 = pnand %p500_p6, %p625_p11 }
  0x33   : > { %p506_p5 = por %p505_p4, %p504_p3 }
  0x34   : > { %v218_v16 = vrot.slane %v217_v14, 4  ;;  %p502_p0 = pneg %p501_p13 }
  0x36   : > { %v219_v17 = vadd.f32 %v218_v16, %v217_v14  ;;  %p507_p7 = pnand %p506_p5, %p502_p0 }
  0x38   : > { %v220_v18 = vrot.slane %v219_v17, 2 }
  0x3a   : > { %v221_v19 = vadd.f32 %v220_v18, %v219_v17 }
  0x3c   : > { %v222_v20 = vrot.slane %v221_v19, 1 }
  0x3e   : > { %v223_v21 = vadd.f32 %v222_v20, %v221_v19 }
  0x40   : > { %v224_v22 = vmax.f32 %v223_v21, 1e-24 }
  0x42   : > { %289 = vperm.xlu0 %446, %v282_v15   ;;  %447 = vrsqrt.f32 %v224_v22  ;;  %vm231_vm1 = vweird.f32 %v224_v22 }
  0x48   : > { %v448_v23 = vpop.eup %447 }
  0x49   : > { %v226_v25 = vmul.f32 %v448_v23, %v224_v22  ;;  %vm232_vm2 = vweird.f32 %v448_v23 }
  0x4a   : > { %vm233_vm4 = vmor %vm231_vm1, %vm232_vm2 }
  0x4b   : > { %v227_v27 = vmul.f32 %v448_v23, %v226_v25 }
  0x4d   : > { %v228_v28 = vmul.f32 0.5, %v227_v27 }
  0x4f   : > { %v229_v32 = vsub.f32 1.5, %v228_v28 }
  0x51   : > { %v230_v35 = vmul.f32 %v448_v23, %v229_v32 }
  0x53   : > { %v234_v39 = vsel %vm233_vm4, %v448_v23, %v230_v35 }
  0xa1   : > { %v199_v24 = vpop.xlane.xlu0 %198 }
  0xa2   : > { %v200_v26 = vmax.f32 %v199_v24, 1e-24 }
  0xa4   : > { %449 = vrsqrt.f32 %v200_v26  ;;  %vm207_vm5 = vweird.f32 %v200_v26 }
  0xaa   : > { %v450_v29 = vpop.eup %449 }
  0xab   : > { %v202_v30 = vmul.f32 %v450_v29, %v200_v26  ;;  %vm208_vm3 = vweird.f32 %v450_v29 }
  0xac   : > { %vm209_vm6 = vmor %vm207_vm5, %vm208_vm3 }
  0xad   : > { %v203_v31 = vmul.f32 %v450_v29, %v202_v30 }
  0xaf   : > { %v204_v33 = vmul.f32 0.5, %v203_v31  ;;  %v255_v37 = vpop.f32.mrf.mxu0 }
  0xb1   : > { %v205_v34 = vsub.f32 1.5, %v204_v33 }
  0xb3   : > { %v206_v36 = vmul.f32 %v450_v29, %v205_v34 }
  0xb4   : > { %v290_v60 = vpop.permute.xlu0 %289 }
  0xb5   : > { %v210_v38 = vsel %vm209_vm6, %v450_v29, %v206_v36  ;;  %vm291_vm9 = vcmp.eq.s32.totalorder %v287_v58, %v290_v60 }
  0xb6   : > { %v258_v40 = vmul.f32 %v255_v37, %v210_v38 }
  0xb8   : > { %v259_v41 = vmul.f32 %v258_v40, %v234_v39 }
  0xba   : > { %v260_v42 = vmul.f32 %v259_v41, %v259_v41  ;;  %v276_v61 = vmul.f32 0.87758255, %v259_v41  ;;  %v390_v0 = vadd.f32 -0.23971277, %v259_v41  ;;  %vm279_vm10 = vcmp.gt.f32.partialorder %v259_v41, -0.87758255 }
  0xbc   : > { %v261_v43 = vsub.f32 1.0, %v260_v42 }
  0xbe   : > { %v262_v44 = vmax.f32 %v261_v43, 0.0 }
  0xc0   : > { %v263_v45 = vmin.f32 %v262_v44, 1.0 }
  0xc2   : > { %451 = vrsqrt.f32 %v263_v45  ;;  %vm271_vm7 = vcmp.eq.f32.partialorder %v263_v45, inf  ;;  %v274_v56 = vand.u32 2147483648, %v263_v45  ;;  %vm273_vm8 = vcmp.eq.f32.partialorder %v263_v45, 0.0 }
  0xc8   : > { %v452_v46 = vpop.eup %451 }
  0xc9   : > { %v265_v47 = vmul.f32 %v452_v46, %v263_v45 }
  0xcb   : > { %v266_v48 = vmul.f32 %v452_v46, %v265_v47 }
  0xcd   : > { %v267_v49 = vmul.f32 0.5, %v266_v48 }
  0xcf   : > { %v268_v51 = vsub.f32 1.5, %v267_v49 }
  0xd1   : > { %v269_v52 = vmul.f32 %v452_v46, %v268_v51 }
  0xd3   : > { %v270_v55 = vmul.f32 %v269_v52, %v263_v45 }
  0xd5   : > { %v272_v57 = vsel %vm271_vm7, %v263_v45, %v270_v55 }
  0xd6   : > { %v275_v59 = vsel %vm273_vm8, %v274_v56, %v272_v57 }
  0xd7   : > { %v277_v62 = vmul.f32 0.47942555, %v275_v59 }
  0xd9   : > { %v278_v63 = vsub.f32 %v276_v61, %v277_v62 }
  0xdb   : > { %v281_v1 = vsel %vm279_vm10, %v278_v63, %v390_v0 }
  0xdc   : > { %v292_v2 = vsel %vm291_vm9, %v281_v1, %v259_v41 }
  0xdd   : > { %v293_v3 = vmul.f32 64.0, %v292_v2 }
  0xdf   : > { %294 = vst [vmem:[%s189_s27] sm:$0xff] %v293_v3 }
  0xe0   : > { %510 = shalt.err (!%p507_p7)
}
  0xe1   : > { %398 = dma.vmem_to_hbm [thread:$0]  (%p625_p11), %s309_s26, 128, %s311_s16, %s296_s28  }
  0xe2 PF: > { %s322_s30 = sand.u32 1, %s537_s12   ;;  %p405_p8 = pnand %p383_p9, %p629_p12 }
  0xe3   : > { %s323_s8 = scalar_lea.sflag [#allocation4], %s322_s30 }
  0xe4   : > { %p406_p10 = pneg %p405_p8 }
  0xe6   : > { %532 = dma.done.wait (%p406_p10), %s323_s8, 128  }
  0xe7   : > { %534 = vsyncadd (%p406_p10), %s323_s8, 4294967168  ;;  %p16_p1 = scmp.ge.s32.totalorder %s600_s18, 4   ;;  %s719_s12 = smov %s541_s13 }
  0xe8   : > { %s720_s13 = smov %s545_s14  ;;  %s721_s14 = smov %s612_s21 }
  0xe9   : > { %s722_s15 = smov %s600_s18  ;;  %18 = sbr.rel (!%p16_p1) target bundleno = 5 (0x5), region = 77 }
  0xee   :  { %329 = vsyncpa [#allocation3], 1 }
  0xef   :  { %331 = vsyncpa [#allocation3 + $0x1], 1 }
  0xf0   :  { %332 = vsyncpa [#allocation4], 1 }
  0xf1   :  { %334 = vsyncpa [#allocation4 + $0x1], 1 }

</bundles_post_ra>
